<compile_context>
chip_gen: v7x
topology: tpu7x:2x2x1
jax: 0.10.0
libtpu: 0.0.40
codegen_flags: <defaults>
</compile_context>

<pallas_src>
import functools

import jax
import jax.numpy as jnp
from jax import lax
from jax.experimental import pallas as pl
from jax.experimental.pallas import tpu as pltpu


def _pad_to(n, m):
    return ((n + m - 1) // m) * m


def _vmem_budget_bytes():
    """~3/4 of this chip's VMEM; safe fallback when the query is unavailable."""
    try:
        return int(pltpu.get_tpu_info().vmem_capacity_bytes * 3 // 4)
    except Exception:
        # Interpret mode / older jax: be conservative (valid even on v7x 64 MiB).
        return 48 * 1024 * 1024


def _vmem_requirement_bytes(np_rows, dp, tm, xn_itemsize):
    f32 = 4
    lane = max(np_rows, 128)
    return (
        2 * np_rows * dp * f32          # input block (double-buffered)
        + 2 * np_rows * dp * f32        # output block (double-buffered)
        + np_rows * dp * xn_itemsize    # xn scratch (normalized rows)
        + dp * dp * f32                 # P = xn^T @ x
        + 8 * dp * f32                  # colsum (sublane-padded)
        + 2 * 8 * lane * f32            # running min / max
        + 4 * tm * lane * f32           # sim tile + mask temps headroom
    )


def age_kernel(x_ref, out_ref, xn_ref, p_ref, colsum_ref, minr_ref, maxr_ref,
               *, tm, n_valid, n_pad, precision):
    """One (batch, row-tile) grid step.

    x_ref     : (Np, Dp) input block (batch squeezed); resident across row tiles.
    out_ref   : (Np, Dp) output block; written once, in the finalize step.
    xn_ref    : (Np, Dp) VMEM scratch — L2-normalized rows (MXU dtype).
    p_ref     : (Dp, Dp) VMEM scratch — P = xn^T @ x (f32).
    colsum_ref: (1, Dp)  VMEM scratch — column sums of x (f32).
    minr_ref  : (8, Np)  VMEM scratch — running element-wise min of sim tiles.
    maxr_ref  : (8, Np)  VMEM scratch — running element-wise max of sim tiles.
    """
    i = pl.program_id(1)
    n_tiles = pl.num_programs(1)

    @pl.when(i == 0)
    def _init():
        x = x_ref[...]                                               # (Np, Dp) f32
        nsq = jnp.sum(x * x, axis=-1, keepdims=True)                 # (Np, 1)
        # rsqrt goes to the EUP slot; the clamp only guards all-zero (padded) rows.
        xn = x * lax.rsqrt(jnp.maximum(nsq, 1e-30))
        xnc = xn.astype(xn_ref.dtype)                                # cast hoisted
        xn_ref[...] = xnc
        # P = xn^T @ x, computed once per batch (contract the row axis of both).
        p_ref[...] = lax.dot_general(
            xnc, x.astype(xn_ref.dtype),
            (((0,), (0,)), ((), ())),
            preferred_element_type=jnp.float32, precision=precision)
        colsum_ref[...] = jnp.sum(x, axis=0, keepdims=True)          # (1, Dp)
        minr_ref[...] = jnp.full(minr_ref.shape, jnp.inf, jnp.float32)
        maxr_ref[...] = jnp.full(maxr_ref.shape, -jnp.inf, jnp.float32)

    # ---- per-tile: similarity statistics only (the output comes from xn @ P) ----
    row0 = pl.multiple_of(i * tm, tm)
    xq = xn_ref[pl.ds(row0, tm), :]                                  # (tm, Dp)
    sim = lax.dot_general(xq, xn_ref[...], (((1,), (1,)), ((), ())),
                          preferred_element_type=jnp.float32,
                          precision=precision)                       # (tm, Np)

    if n_pad > 0:
        rows = lax.broadcasted_iota(jnp.int32, sim.shape, 0) + row0
        cols = lax.broadcasted_iota(jnp.int32, sim.shape, 1)
        valid = (rows < n_valid) & (cols < n_valid)
        sim_lo = jnp.where(valid, sim, jnp.inf)
        sim_hi = jnp.where(valid, sim, -jnp.inf)
    else:
        sim_lo = sim
        sim_hi = sim

    # Fold the leading row-blocks with VPU mins/maxes (layout-preserving reshape);
    # the single cross-lane/sublane collapse to a scalar is left to the finalize.
    np_cols = sim.shape[1]
    minr_ref[...] = jnp.minimum(
        minr_ref[...], jnp.min(sim_lo.reshape(tm // 8, 8, np_cols), axis=0))
    maxr_ref[...] = jnp.maximum(
        maxr_ref[...], jnp.max(sim_hi.reshape(tm // 8, 8, np_cols), axis=0))

    @pl.when(i == n_tiles - 1)
    def _finalize():
        smin = jnp.min(minr_ref[...], keepdims=True)                 # (1, 1)
        smax = jnp.max(maxr_ref[...], keepdims=True)                 # (1, 1)
        inv = 1.0 / (smax - smin)            # unguarded, matches the PyTorch module
        # ((sim - smin)/(smax - smin)) @ x == (xn @ P - smin * colsum(x)) * inv
        acc = lax.dot_general(xn_ref[...], p_ref[...].astype(xn_ref.dtype),
                              (((1,), (0,)), ((), ())),
                              preferred_element_type=jnp.float32,
                              precision=precision)                   # (Np, Dp)
        out_ref[...] = ((acc - smin * colsum_ref[...]) * inv).astype(out_ref.dtype)


def age_base_forward(tgt, *, use_bf16_mxu=False):
    """tgt: (B, N, D) float32 -> (B, N, D) float32 (AGE_base.forward).

    use_bf16_mxu: feed bf16 inputs to the MXU (f32 accumulation). Off by default
    to keep the 1e-4 tolerance against the f32 reference.
    """
    B, N, D = tgt.shape

    # Lane-dense padding of d_model; sublane/lane-friendly padding of N.  Zero
    # padding changes neither row norms, P, nor colsum; padded rows/cols are
    # masked out of the min/max inside the kernel and sliced off here.
    Dp = _pad_to(D, 128)
    Np = _pad_to(N, 128) if N >= 128 else _pad_to(N, 8)
    if (Np, Dp) != (N, D):
        x = jnp.pad(tgt, ((0, 0), (0, Np - N), (0, Dp - D)))
    else:
        x = tgt

    xn_dtype = jnp.bfloat16 if use_bf16_mxu else jnp.float32
    precision = lax.Precision.DEFAULT if use_bf16_mxu else lax.Precision.HIGHEST

    # Row tile: largest multiple-of-8 divisor of Np (capped at 256 for v7x VMEM)
    # whose estimated footprint fits the per-chip budget.
    budget = _vmem_budget_bytes()
    xn_item = jnp.dtype(xn_dtype).itemsize
    tm = 8
    for cand in (256, 128, 64, 32, 16, 8):
        if Np % cand:
            continue
        tm = cand
        if int(_vmem_requirement_bytes(Np, Dp, cand, xn_item) * 1.25) <= budget:
            break
    assert tm % 8 == 0 and Np % tm == 0
    n_tiles = Np // tm

    req = int(_vmem_requirement_bytes(Np, Dp, tm, xn_item) * 1.25)
    vmem_limit = max(16 * 1024 * 1024, min(req, budget))

    kernel = functools.partial(
        age_kernel, tm=tm, n_valid=N, n_pad=(Np - N), precision=precision)

    out = pl.pallas_call(
        kernel,
        out_shape=jax.ShapeDtypeStruct((B, Np, Dp), tgt.dtype),
        grid_spec=pltpu.PrefetchScalarGridSpec(
            num_scalar_prefetch=0,
            grid=(B, n_tiles),
            in_specs=[pl.BlockSpec((None, Np, Dp), lambda b, i: (b, 0, 0))],
            out_specs=pl.BlockSpec((None, Np, Dp), lambda b, i: (b, 0, 0)),
            scratch_shapes=[
                pltpu.VMEM((Np, Dp), xn_dtype),      # xn (normalized rows)
                pltpu.VMEM((Dp, Dp), jnp.float32),   # P = xn^T @ x
                pltpu.VMEM((1, Dp), jnp.float32),    # colsum(x)
                pltpu.VMEM((8, Np), jnp.float32),    # running min
                pltpu.VMEM((8, Np), jnp.float32),    # running max
            ],
        ),
        compiler_params=pltpu.CompilerParams(
            # Batch axis -> megacore on multi-TensorCore parts; the row-tile
            # axis carries the min/max accumulation -> "arbitrary".
            dimension_semantics=("parallel", "arbitrary"),
            vmem_limit_bytes=vmem_limit),
    )(x)

    if (Np, Dp) != (N, D):
        out = out[:, :N, :D]
    return out


def age_base_reference(tgt):
    """Pure-JAX reference matching the PyTorch module."""
    hi = lax.Precision.HIGHEST
    norm = jnp.linalg.norm(tgt, axis=-1, keepdims=True)
    tn = tgt / norm
    sim = jnp.einsum("bnd,bmd->bnm", tn, tn, precision=hi)
    smin = jnp.min(sim.reshape(sim.shape[0], -1), axis=1).reshape(-1, 1, 1)
    smax = jnp.max(sim.reshape(sim.shape[0], -1), axis=1).reshape(-1, 1, 1)
    w = (sim - smin) / (smax - smin)
    return jnp.einsum("bnm,bmd->bnd", w, tgt, precision=hi)


def init_params(d_model, key):
    """Deterministic init of the (unused-in-forward) nn.Linear(d_model, 1)."""
    limit = jnp.sqrt(6.0 / (d_model + 1))
    k_w, k_b = jax.random.split(key)
    w = jax.random.uniform(k_w, (1, d_model), jnp.float32, -limit, limit)
    b_limit = 1.0 / jnp.sqrt(d_model)
    b = jax.random.uniform(k_b, (1,), jnp.float32, -b_limit, b_limit)
    return {"w.weight": w, "w.bias": b}


if __name__ == "__main__":
    key = jax.random.PRNGKey(0)
    k_tgt, k_params = jax.random.split(key)

    B, N, D = 2, 8, 32          # small shapes for the synthetic test
    tgt = jax.random.normal(k_tgt, (B, N, D), dtype=jnp.float32)

    _ = init_params(D, k_params)  # parameters exist but are unused in forward

    out = jax.block_until_ready(age_base_forward(tgt))
    ref = age_base_reference(tgt)

    assert out.shape == (B, N, D)
    assert jnp.allclose(out, ref, atol=1e-4, rtol=1e-4), \
        float(jnp.max(jnp.abs(out - ref)))

    print("KERNEL_OK")
</pallas_src>

<mosaic_0001>
module attributes {stable_mosaic.version = 11 : i64} {
  func.func @age_kernel(%arg0: i32, %arg1: i32, %arg2: memref<1x8x128xf32, #tpu.memory_space<vmem>>, %arg3: memref<1x8x128xf32, #tpu.memory_space<vmem>>, %arg4: memref<8x128xf32, #tpu.memory_space<vmem>>, %arg5: memref<128x128xf32, #tpu.memory_space<vmem>>, %arg6: memref<1x128xf32, #tpu.memory_space<vmem>>, %arg7: memref<8x8xf32, #tpu.memory_space<vmem>>, %arg8: memref<8x8xf32, #tpu.memory_space<vmem>>) attributes {dimension_semantics = [#tpu.dimension_semantics<parallel>, #tpu.dimension_semantics<arbitrary>], iteration_bounds = array<i64: 2, 1>, scalar_prefetch = 0 : i64, scratch_operands = 5 : i64, tpu.core_type = #tpu.core_type<tc>, window_params = [{transform_indices = @transform_0, window_bounds = array<i64: 1, 8, 128>}, {transform_indices = @transform_1, window_bounds = array<i64: 1, 8, 128>}]} {
    %c0_i32 = arith.constant 0 : i32
    %0 = arith.cmpi eq, %arg1, %c0_i32 : i32
    %1 = arith.extui %0 : i1 to i32
    %c0_i32_0 = arith.constant 0 : i32
    %2 = arith.cmpi ne, %1, %c0_i32_0 : i32
    scf.if %2 {
      %c0_15 = arith.constant 0 : index
      %c0_16 = arith.constant 0 : index
      %c0_17 = arith.constant 0 : index
      %22 = vector.load %arg2[%c0_15, %c0_16, %c0_17] : memref<1x8x128xf32, #tpu.memory_space<vmem>>, vector<1x8x128xf32>
      %23 = vector.shape_cast %22 : vector<1x8x128xf32> to vector<8x128xf32>
      %24 = arith.mulf %23, %23 : vector<8x128xf32>
      %cst_18 = arith.constant dense<0.000000e+00> : vector<8xf32>
      %25 = vector.multi_reduction <add>, %24, %cst_18 [1] : vector<8x128xf32> to vector<8xf32>
      %26 = vector.shape_cast %25 : vector<8xf32> to vector<8x1xf32>
      %cst_19 = arith.constant 1.000000e-30 : f32
      %27 = vector.broadcast %cst_19 : f32 to vector<8x1xf32>
      %28 = arith.maximumf %26, %27 : vector<8x1xf32>
      %29 = math.rsqrt %28 : vector<8x1xf32>
      %30 = vector.broadcast %29 : vector<8x1xf32> to vector<8x128xf32>
      %31 = arith.mulf %23, %30 : vector<8x128xf32>
      %c0_20 = arith.constant 0 : index
      %c0_21 = arith.constant 0 : index
      %32 = vector.load %arg4[%c0_20, %c0_21] : memref<8x128xf32, #tpu.memory_space<vmem>>, vector<8x128xf32>
      tpu.vector_store %arg4[%c0_20, %c0_21], %31 {strides = array<i32>} : memref<8x128xf32, #tpu.memory_space<vmem>>, vector<8x128xf32>,
      %cst_22 = arith.constant dense<0.000000e+00> : vector<128x128xf32>
      %33 = tpu.matmul %31, %23, %cst_22 {dimension_numbers = #tpu.dot_dimension_numbers<[0], [0], [1], [1], [0, 1, 1, 1], [], []>, precision = #tpu.contract_precision<fp32>} : vector<8x128xf32>, vector<8x128xf32>, vector<128x128xf32> -> vector<128x128xf32>
      %c0_23 = arith.constant 0 : index
      %c0_24 = arith.constant 0 : index
      %34 = vector.load %arg5[%c0_23, %c0_24] : memref<128x128xf32, #tpu.memory_space<vmem>>, vector<128x128xf32>
      tpu.vector_store %arg5[%c0_23, %c0_24], %33 {strides = array<i32>} : memref<128x128xf32, #tpu.memory_space<vmem>>, vector<128x128xf32>,
      %cst_25 = arith.constant dense<0.000000e+00> : vector<128xf32>
      %35 = vector.multi_reduction <add>, %23, %cst_25 [0] : vector<8x128xf32> to vector<128xf32>
      %36 = vector.shape_cast %35 : vector<128xf32> to vector<1x128xf32>
      %c0_26 = arith.constant 0 : index
      %c0_27 = arith.constant 0 : index
      %37 = vector.load %arg6[%c0_26, %c0_27] : memref<1x128xf32, #tpu.memory_space<vmem>>, vector<1x128xf32>
      tpu.vector_store %arg6[%c0_26, %c0_27], %36 {strides = array<i32>} : memref<1x128xf32, #tpu.memory_space<vmem>>, vector<1x128xf32>,
      %cst_28 = arith.constant 0x7F800000 : f32
      %38 = vector.broadcast %cst_28 : f32 to vector<8x8xf32>
      %c0_29 = arith.constant 0 : index
      %c0_30 = arith.constant 0 : index
      %39 = vector.load %arg7[%c0_29, %c0_30] : memref<8x8xf32, #tpu.memory_space<vmem>>, vector<8x8xf32>
      tpu.vector_store %arg7[%c0_29, %c0_30], %38 {strides = array<i32>} : memref<8x8xf32, #tpu.memory_space<vmem>>, vector<8x8xf32>,
      %cst_31 = arith.constant 0xFF800000 : f32
      %40 = vector.broadcast %cst_31 : f32 to vector<8x8xf32>
      %c0_32 = arith.constant 0 : index
      %c0_33 = arith.constant 0 : index
      %41 = vector.load %arg8[%c0_32, %c0_33] : memref<8x8xf32, #tpu.memory_space<vmem>>, vector<8x8xf32>
      tpu.vector_store %arg8[%c0_32, %c0_33], %40 {strides = array<i32>} : memref<8x8xf32, #tpu.memory_space<vmem>>, vector<8x8xf32>,
    } else {
    }
    %c8_i32 = arith.constant 8 : i32
    %3 = arith.muli %arg1, %c8_i32 : i32
    %4 = tpu.assume_multiple %3, 8 : i32
    %5 = arith.index_cast %4 : i32 to index
    %c0 = arith.constant 0 : index
    %6 = vector.load %arg4[%5, %c0] : memref<8x128xf32, #tpu.memory_space<vmem>>, vector<8x128xf32>
    %c0_1 = arith.constant 0 : index
    %c0_2 = arith.constant 0 : index
    %7 = vector.load %arg4[%c0_1, %c0_2] : memref<8x128xf32, #tpu.memory_space<vmem>>, vector<8x128xf32>
    %cst = arith.constant dense<0.000000e+00> : vector<8x8xf32>
    %8 = tpu.matmul %6, %7, %cst {dimension_numbers = #tpu.dot_dimension_numbers<[1], [1], [0], [0], [0, 0, 1, 0], [], []>, precision = #tpu.contract_precision<fp32>} : vector<8x128xf32>, vector<8x128xf32>, vector<8x8xf32> -> vector<8x8xf32>
    %c0_3 = arith.constant 0 : index
    %c0_4 = arith.constant 0 : index
    %9 = vector.load %arg7[%c0_3, %c0_4] : memref<8x8xf32, #tpu.memory_space<vmem>>, vector<8x8xf32>
    %10 = vector.shape_cast %8 : vector<8x8xf32> to vector<1x8x8xf32>
    %cst_5 = arith.constant dense<0x7F800000> : vector<8x8xf32>
    %11 = vector.multi_reduction <minimumf>, %10, %cst_5 [0] : vector<1x8x8xf32> to vector<8x8xf32>
    %12 = arith.minimumf %9, %11 : vector<8x8xf32>
    %c0_6 = arith.constant 0 : index
    %c0_7 = arith.constant 0 : index
    %13 = vector.load %arg7[%c0_6, %c0_7] : memref<8x8xf32, #tpu.memory_space<vmem>>, vector<8x8xf32>
    tpu.vector_store %arg7[%c0_6, %c0_7], %12 {strides = array<i32>} : memref<8x8xf32, #tpu.memory_space<vmem>>, vector<8x8xf32>,
    %c0_8 = arith.constant 0 : index
    %c0_9 = arith.constant 0 : index
    %14 = vector.load %arg8[%c0_8, %c0_9] : memref<8x8xf32, #tpu.memory_space<vmem>>, vector<8x8xf32>
    %15 = vector.shape_cast %8 : vector<8x8xf32> to vector<1x8x8xf32>
    %cst_10 = arith.constant dense<0xFF800000> : vector<8x8xf32>
    %16 = vector.multi_reduction <maximumf>, %15, %cst_10 [0] : vector<1x8x8xf32> to vector<8x8xf32>
    %17 = arith.maximumf %14, %16 : vector<8x8xf32>
    %c0_11 = arith.constant 0 : index
    %c0_12 = arith.constant 0 : index
    %18 = vector.load %arg8[%c0_11, %c0_12] : memref<8x8xf32, #tpu.memory_space<vmem>>, vector<8x8xf32>
    tpu.vector_store %arg8[%c0_11, %c0_12], %17 {strides = array<i32>} : memref<8x8xf32, #tpu.memory_space<vmem>>, vector<8x8xf32>,
    %c0_i32_13 = arith.constant 0 : i32
    %19 = arith.cmpi eq, %arg1, %c0_i32_13 : i32
    %20 = arith.extui %19 : i1 to i32
    %c0_i32_14 = arith.constant 0 : i32
    %21 = arith.cmpi ne, %20, %c0_i32_14 : i32
    scf.if %21 {
      %c0_15 = arith.constant 0 : index
      %c0_16 = arith.constant 0 : index
      %22 = vector.load %arg7[%c0_15, %c0_16] : memref<8x8xf32, #tpu.memory_space<vmem>>, vector<8x8xf32>
      %23 = vector.shape_cast %22 : vector<8x8xf32> to vector<1x8x8xf32>
      %cst_17 = arith.constant dense<0x7F800000> : vector<1xf32>
      %24 = vector.multi_reduction <minimumf>, %23, %cst_17 [1, 2] : vector<1x8x8xf32> to vector<1xf32>
      %25 = vector.shape_cast %24 : vector<1xf32> to vector<1x1x1xf32>
      %26 = vector.extract %25[0, 0, 0] : f32 from vector<1x1x1xf32>
      %27 = vector.broadcast %26 : f32 to vector<1x1xf32>
      %c0_18 = arith.constant 0 : index
      %c0_19 = arith.constant 0 : index
      %28 = vector.load %arg8[%c0_18, %c0_19] : memref<8x8xf32, #tpu.memory_space<vmem>>, vector<8x8xf32>
      %29 = vector.shape_cast %28 : vector<8x8xf32> to vector<1x8x8xf32>
      %cst_20 = arith.constant dense<0xFF800000> : vector<1xf32>
      %30 = vector.multi_reduction <maximumf>, %29, %cst_20 [1, 2] : vector<1x8x8xf32> to vector<1xf32>
      %31 = vector.shape_cast %30 : vector<1xf32> to vector<1x1x1xf32>
      %32 = vector.extract %31[0, 0, 0] : f32 from vector<1x1x1xf32>
      %33 = vector.broadcast %32 : f32 to vector<1x1xf32>
      %34 = arith.subf %33, %27 : vector<1x1xf32>
      %cst_21 = arith.constant 1.000000e+00 : f32
      %35 = vector.broadcast %cst_21 : f32 to vector<1x1xf32>
      %36 = arith.divf %35, %34 : vector<1x1xf32>
      %c0_22 = arith.constant 0 : index
      %c0_23 = arith.constant 0 : index
      %37 = vector.load %arg4[%c0_22, %c0_23] : memref<8x128xf32, #tpu.memory_space<vmem>>, vector<8x128xf32>
      %c0_24 = arith.constant 0 : index
      %c0_25 = arith.constant 0 : index
      %38 = vector.load %arg5[%c0_24, %c0_25] : memref<128x128xf32, #tpu.memory_space<vmem>>, vector<128x128xf32>
      %cst_26 = arith.constant dense<0.000000e+00> : vector<8x128xf32>
      %39 = tpu.matmul %37, %38, %cst_26 {dimension_numbers = #tpu.dot_dimension_numbers<[1], [0], [0], [1], [0, 0, 1, 1], [], []>, precision = #tpu.contract_precision<fp32>} : vector<8x128xf32>, vector<128x128xf32>, vector<8x128xf32> -> vector<8x128xf32>
      %c0_27 = arith.constant 0 : index
      %c0_28 = arith.constant 0 : index
      %40 = vector.load %arg6[%c0_27, %c0_28] : memref<1x128xf32, #tpu.memory_space<vmem>>, vector<1x128xf32>
      %41 = vector.broadcast %27 : vector<1x1xf32> to vector<1x128xf32>
      %42 = arith.mulf %41, %40 : vector<1x128xf32>
      %43 = vector.broadcast %42 : vector<1x128xf32> to vector<8x128xf32>
      %44 = arith.subf %39, %43 : vector<8x128xf32>
      %45 = vector.broadcast %36 : vector<1x1xf32> to vector<8x128xf32>
      %46 = arith.mulf %44, %45 : vector<8x128xf32>
      %c0_29 = arith.constant 0 : index
      %c0_30 = arith.constant 0 : index
      %c0_31 = arith.constant 0 : index
      %47 = vector.load %arg3[%c0_29, %c0_30, %c0_31] : memref<1x8x128xf32, #tpu.memory_space<vmem>>, vector<1x8x128xf32>
      %48 = vector.shape_cast %47 : vector<1x8x128xf32> to vector<8x128xf32>
      %49 = vector.shape_cast %46 : vector<8x128xf32> to vector<1x8x128xf32>
      tpu.vector_store %arg3[%c0_29, %c0_30, %c0_31], %49 {strides = array<i32>} : memref<1x8x128xf32, #tpu.memory_space<vmem>>, vector<1x8x128xf32>,
    } else {
    }
    return
  }
  func.func @transform_0(%arg0: i32, %arg1: i32) -> (i32, i32, i32) {
    %c0_i32 = arith.constant 0 : i32
    %c0_i32_0 = arith.constant 0 : i32
    %c0_i32_1 = arith.constant 0 : i32
    return %arg0, %c0_i32, %c0_i32_0 : i32, i32, i32
  }
  func.func @transform_1(%arg0: i32, %arg1: i32) -> (i32, i32, i32) {
    %c0_i32 = arith.constant 0 : i32
    %c0_i32_0 = arith.constant 0 : i32
    %c0_i32_1 = arith.constant 0 : i32
    return %arg0, %c0_i32, %c0_i32_0 : i32, i32, i32
  }
}

</mosaic_0001>

<bundles_post_ra>
// kernel: tpu_custom_call.1
= control target key start
LH: loop header
LB: loop body
LE: loop exit
PB: predicated region body
PF: predicated region fallthrough
CT: control target
= control target key end

     0   :  { %6 = vsyncpa [#allocation8], 0  ;;  %s4405_s0 = inlined_call_operand.hbm [shape: f32[2,8,128], index: 0, kind: input, shape index: {}]   ;;  %s4406_s1 = inlined_call_operand.hbm [shape: f32[2,8,128], index: 1, kind: output, shape index: {}]  }
   0x1   :  { %8 = vsyncpa [#allocation8 + $0x1], 0 }
   0x2   :  { %9 = vsyncpa [#allocation9], 0 }
   0x3   :  { %11 = vsyncpa [#allocation9 + $0x1], 0  ;;  %s3679_s6 = smov 0   ;;  %s3681_s7 = smov 0  }
   0x4   :  { %s3683_s8 = smov 0   ;;  %s3685_s9 = smov 0  }
   0x5   :  { %s3687_s10 = smov 0   ;;  %s3689_s11 = smov 0  }
   0x6 LB: > { %s2603_s12 = sadd.s32 4294967295, %s3660_s11   ;;  %s2604_s13 = sadd.s32 4294967294, %s3660_s11   ;;  %s3660_s11 = sphi %s3689_s11, %s17_s11   ;;  %s3656_s10 = sphi %s3687_s10, %s4422_s10   ;;  %s3652_s9 = sphi %s3685_s9, %s4421_s9   ;;  %s3648_s8 = sphi %s3683_s8, %s4420_s8   ;;  %s3644_s7 = sphi %s3681_s7, %s4419_s7   ;;  %s3640_s6 = sphi %s3679_s6, %s4418_s6  }
   0x7   : > { %s29_s14 = sadd.s32 1, %s3656_s10  ;;  %s36_s15 = sadd.s32 1, %s3648_s8 }
   0x8   : > { %p31_p0 = scmp.ge.s32.totalorder %s29_s14, 2  ;;  %p43_p1 = scmp.ne.s32.totalorder %s3648_s8, %s3644_s7 }
   0x9   : > { %p44_p2 = scmp.eq.s32.totalorder %s3660_s11, 0  ;;  %p49_p3 = scmp.ne.s32.totalorder %s3644_s7, %s3640_s6 }
   0xa   : > { %s4424_s14 = smov (%p31_p0, %s29_s14), 0  ;;  %p50_p5 = scmp.eq.s32.totalorder %s2603_s12, 0 }
   0xb   : > { %p3720_p4 = por %p44_p2, %p43_p1  ;;  %s33_s17 = ssub.s32 %s3656_s10, %s4424_s14 }
   0xc   : > { %p73_p6 = scmp.eq.s32.totalorder %s2603_s12, 1  ;;  %p34_p7 = scmp.eq.s32.totalorder %s33_s17, 0 }
   0xd   : > { %p3726_p8 = por %p50_p5, %p49_p3  ;;  %p79_p10 = scmp.eq.s32.totalorder %s2604_s13, 1 }
   0xe   : > { %p3730_p9 = por %p73_p6, %p43_p1  ;;  %p3489_p13 = scmp.lt.s32.totalorder %s3660_s11, 2 }
   0xf   : > { %s3735_s20 = scalar_select %p34_p7, %s3648_s8, %s36_s15  }
  0x10   : > { %s4410_s19 = scalar_select %p3730_p9, 1, 0 }
  0x11   : > { %p3737_p11 = por %p79_p10, %p49_p3  ;;  %s99_s22 = sand.u32 1, %s3648_s8  }
  0x12   : > { %s2607_s23 = sshll.u32 %s99_s22, 3  ;;  %s2608_s24 = sshll.u32 %s3656_s10, 7 }
  0x13   : > { %s4411_s21 = scalar_select %p3737_p11, 1, 0 }
  0x14   : > { %s3748_s27 = scalar_lea.hbm %s4405_s0, %s2608_s24  ;;  %s103_s28 = scalar_lea.vmem [#allocation7], %s2607_s23 }
  0x15   : > { %s110_s29 = sshll.u32 %s103_s28, 4  ;;  %p3754_p0 = pnand %p3489_p13, %p3720_p4  ;;  %s3750_s29 = int_to_ptr.vmem [resolvable:$true] %s110_s29 }
  0x16   : > { %s100_s2 = scalar_lea.sflag [#allocation8], %s99_s22  ;;  %s3548_s3 = scalar_lea.hbm %s3748_s27, 128 }
  0x17   : > { %p3549_p3 = scmp.ne.s32.totalorder %s3748_s27, %s3548_s3  ;;  %p3550_p5 = pneg %p3754_p0 }
  0x18   : > { %s3553_s12 = scalar_lea.hbm %s4405_s0, 256  ;;  %p3554_p4 = scmp.lt.u32.totalorder %s3748_s27, %s4405_s0 }
  0x19   : > { %p3551_p6 = pnand %p3550_p5, %p3549_p3  ;;  %p3555_p10 = scmp.lt.u32.totalorder %s3553_s12, %s3548_s3 }
  0x1a   : > { %p3557_p12 = scmp.lt.u32.totalorder %s3548_s3, %s3748_s27 }
  0x1b   : > { %p3552_p7 = pneg %p3551_p6  ;;  %p3556_p13 = por %p3555_p10, %p3554_p4 }
  0x1d   : > { %p3558_p1 = por %p3557_p12, %p3556_p13 }
  0x1f   : > { %p3559_p2 = pnand %p3558_p1, %p3552_p7 }
  0x21   : > { %3562 = shalt.err (!%p3559_p2)
}
  0x22   : > { %s3563_s16 = scalar_lea.vmem %s3750_s29, 128  ;;  %s3662_s17 = smov [#allocation7]  }
  0x23   : > { %p3564_p3 = scmp.ne.s32.totalorder %s3750_s29, %s3563_s16  ;;  %s3568_s22 = sshll.u32 %s3662_s17, 4  ;;  %s3569_s22 = int_to_ptr.vmem [resolvable:$false] %s3568_s22 }
  0x24   : > { %s3570_s23 = scalar_lea.vmem %s3569_s22, 256  ;;  %p3571_p9 = scmp.lt.s32.totalorder %s3750_s29, %s3569_s22 }
  0x25   : > { %p3566_p6 = pnand %p3564_p3, %p3550_p5  ;;  %p3572_p4 = scmp.lt.s32.totalorder %s3570_s23, %s3563_s16 }
  0x27   : > { %p3567_p11 = pneg %p3566_p6  ;;  %p3573_p10 = por %p3572_p4, %p3571_p9 }
  0x29   : > { %p3574_p12 = pnand %p3573_p10, %p3567_p11 }
  0x2b   : > { %3577 = shalt.err (!%p3574_p12)
}
  0x2c   : > { %3484 = dma.hbm_to_vmem [thread:$0]  (!%p3754_p0), %s3748_s27, 128, %s3750_s29, %s100_s2  }
  0x2d   : > { %p4413_p1 = scmp.lt.s32.totalorder %s3660_s11, 3  ;;  %p4414_p2 = scmp.ge.s32.totalorder %s3660_s11, 1 }
  0x2f   : > { %p116_p5 = pnand %p4414_p2, %p4413_p1 }
  0x30   : > { %s3790_s24 = sand.u32 (!%p116_p5), 1, %s3644_s7  }
  0x31   : > { %119 = sbr.rel (%p116_p5) target bundleno = 1159 (0x487), region = 24  ;;  %s2610_s25 = sshll.u32 (!%p116_p5), %s3790_s24, 3 }
  0x32   : > { %s122_s26 = scalar_lea.sflag (!%p116_p5), [#allocation8], %s3790_s24  ;;  %s125_s28 = scalar_lea.vmem (!%p116_p5), [#allocation7], %s2610_s25 }
  0x38   : > { %3631 = dma.done.wait (%p3726_p8), %s122_s26, 128  }
  0x39   : > { %3633 = vsyncadd (%p3726_p8), %s122_s26, 4294967168  ;;  %v148_v0 = vld [vmem:[%s125_s28] sm:$0xff]  ;;  %v3663_v17 = vmov 0.0   ;;  %vm188_vm0 = vcmask 64512   ;;  %vm3664_vm1 = vmmov 0   ;;  %s2613_s29 = sshll.u32 %s3652_s9, 7 }
  0x3a   : > { %v149_v1 = vmul.f32 %v148_v0, %v148_v0  ;;  %v3800_v2 = vand.u32 4294901760, %v148_v0  ;;  %v1344_v3 = vrot.slane %v148_v0, 4  ;;  %s143_s30 = scalar_lea.vmem [#allocation10], %s2610_s25  ;;  %s4356_s5 = scalar_lea.hbm %s4406_s1, %s2613_s29 }
  0x3b   : > { %s2523_s2 = sshll.u32 %s143_s30, 4  ;;  %s2510_s12 = scalar_lea.sflag [#allocation9], %s3790_s24  ;;  %s4358_s2 = int_to_ptr.vmem [resolvable:$true] %s2523_s2 }
  0x3c   : > { %v1345_v4 = vadd.f32 %v1344_v3, %v148_v0  ;;  %150 = vadd.xlane.f32.xlu0 %v149_v1  ;;  %2832 = vmatprep.subr.mxu0 %v3800_v2  ;;  %v3810_v13 = vsub.f32 %v148_v0, %v3800_v2  ;;  %s3578_s13 = scalar_lea.vmem %s4358_s2, 128  ;;  %p4415_p9 = scmp.ne.s32.totalorder %s4410_s19, 0 }
  0x3d   : > { %2833 = vmatpush3.msra.mxu0 %v3800_v2  ;;  %3372 = vmatprep.subr.mxu1 %v3800_v2  ;;  %p3579_p8 = scmp.ne.s32.totalorder %s4358_s2, %s3578_s13  ;;  %s3668_s9 = smov [#allocation10]  }
  0x3e   : > { %v1346_v5 = vrot.slane %v1345_v4, 2  ;;  %3373 = vmatpush3.msra.mxu1 %v3800_v2  ;;  %v3813_v14 = vand.u32 4294901760, %v3810_v13  ;;  %s3582_s15 = sshll.u32 %s3668_s9, 4  ;;  %s3583_s15 = int_to_ptr.vmem [resolvable:$false] %s3582_s15 }
  0x3f   : > { %2988 = vmatprep.subr.mxu1 %v3663_v17  ;;  %p3580_p11 = pnand %p3579_p8, %p4415_p9  ;;  %s3584_s16 = scalar_lea.vmem %s3583_s15, 256 }
  0x40   : > { %v1347_v6 = vadd.f32 %v1346_v5, %v1345_v4  ;;  %v467_v15 = vsub.f32 %v3810_v13, %v3813_v14  ;;  %p3585_p7 = scmp.lt.s32.totalorder %s4358_s2, %s3583_s15  ;;  %p3586_p13 = scmp.lt.s32.totalorder %s3584_s16, %s3578_s13 }
  0x41   : > { %p3581_p0 = pneg %p3580_p11 }
  0x42   : > { %v1348_v7 = vrot.slane %v1347_v6, 1  ;;  %v468_v16 = vand.u32 4294901760, %v467_v15  ;;  %p3587_p3 = por %p3586_p13, %p3585_p7 }
  0x44   : > { %v1349_v8 = vadd.f32 %v1348_v7, %v1347_v6  ;;  %2858 = vmatprep.subr.mxu0 %v468_v16  ;;  %p3588_p6 = pnand %p3587_p3, %p3581_p0 }
  0x46   : > { %1350 = vst [vmem:[#allocation4] sm:$0x1] %v1349_v8 }
  0xc9   : > { %v151_v9 = vpop.xlane.xlu0 %150 }
  0xca   : > { %v152_v10 = vmax.f32 %v151_v9, 1e-30 }
  0xcc   : > { %3544 = vrsqrt.f32 %v152_v10 }
  0xd6   : > { %v3545_v11 = vpop.eup %3544 }
  0xd7   : > { %v3806_v12 = vmul.f32 %v3545_v11, %v148_v0 }
  0xd9   : > { %156 = vxpose.xlu0.b32.start.end [1/1] (short) %v3806_v12, 128 }
 0x159   : > { %v172_v18 = vpop.trf.xlu0 }
 0x15a   : > { %v190_v19 = vsel %vm188_vm0, %v172_v18, 0 }
 0x15b   : > { %v3819_v20 = vand.u32 4294901760, %v190_v19 }
 0x15d   : > { %v3822_v21 = vsub.f32 %v190_v19, %v3819_v20  ;;  %v173_v22 = vpop.trf.xlu0 }
 0x15e   : > { %v193_v23 = vsel %vm188_vm0, %v173_v22, 0 }
 0x15f   : > { %v3825_v24 = vand.u32 4294901760, %v193_v23  ;;  %v305_v25 = vand.u32 4294901760, %v3822_v21 }
 0x161   : > { %v3829_v26 = vsub.f32 %v193_v23, %v3825_v24  ;;  %v174_v27 = vpop.trf.xlu0  ;;  %v306_v28 = vsub.f32 %v3822_v21, %v305_v25 }
 0x162   : > { %v196_v29 = vsel %vm188_vm0, %v174_v27, 0 }
 0x163   : > { %v315_v30 = vand.u32 4294901760, %v3829_v26  ;;  %v3836_v31 = vand.u32 4294901760, %v196_v29  ;;  %v307_v32 = vand.u32 4294901760, %v306_v28 }
 0x165   : > { %v3839_v33 = vsub.f32 %v196_v29, %v3836_v31  ;;  %2834 = vmatprep.mubr.f32.mxu0 %v307_v32  ;;  %v175_v34 = vpop.trf.xlu0  ;;  %v316_v35 = vsub.f32 %v3829_v26, %v315_v30 }
 0x166   : > { %v199_v36 = vsel %vm188_vm0, %v175_v34, 0 }
 0x167   : > { %v325_v37 = vand.u32 4294901760, %v3839_v33  ;;  %v3846_v38 = vand.u32 4294901760, %v199_v36  ;;  %v317_v39 = vand.u32 4294901760, %v316_v35 }
 0x169   : > { %v3849_v40 = vsub.f32 %v199_v36, %v3846_v38  ;;  %2835 = vmatmul.mubr.f32.vlgmr.msra.gmra.mrb[0].mxu0 %v317_v39  ;;  %v176_v41 = vpop.trf.xlu0  ;;  %v326_v42 = vsub.f32 %v3839_v33, %v325_v37 }
 0x16a   : > { %v202_v43 = vsel %vm188_vm0, %v176_v41, 0  ;;  %2859 = vmatpush3.msra.mxu0 %v468_v16 }
 0x16b   : > { %v335_v44 = vand.u32 4294901760, %v3849_v40  ;;  %v3856_v45 = vand.u32 4294901760, %v202_v43  ;;  %v327_v46 = vand.u32 4294901760, %v326_v42  ;;  %2884 = vmatprep.subr.mxu0 %v3810_v13 }
 0x16d   : > { %v3860_v47 = vsub.f32 %v202_v43, %v3856_v45  ;;  %2837 = vmatprep.mubr.f32.mxu0 %v327_v46  ;;  %v177_v48 = vpop.trf.xlu0  ;;  %v336_v49 = vsub.f32 %v3849_v40, %v335_v44 }
 0x16e   : > { %v205_v50 = vsel %vm188_vm0, %v177_v48, 0 }
 0x16f   : > { %v345_v51 = vand.u32 4294901760, %v3860_v47  ;;  %v3867_v52 = vand.u32 4294901760, %v205_v50  ;;  %v337_v53 = vand.u32 4294901760, %v336_v49 }
 0x171   : > { %v3870_v54 = vsub.f32 %v205_v50, %v3867_v52  ;;  %2838 = vmatmul.mubr.f32.gmra.mrb[2].mxu0 %v337_v53  ;;  %v178_v55 = vpop.trf.xlu0  ;;  %v346_v56 = vsub.f32 %v3860_v47, %v345_v51 }
 0x172   : > { %v208_v57 = vsel %vm188_vm0, %v178_v55, 0 }
 0x173   : > { %v355_v58 = vand.u32 4294901760, %v3870_v54  ;;  %v3877_v59 = vand.u32 4294901760, %v208_v57  ;;  %v347_v60 = vand.u32 4294901760, %v346_v56 }
 0x175   : > { %v3880_v61 = vsub.f32 %v208_v57, %v3877_v59  ;;  %2840 = vmatprep.mubr.f32.mxu0 %v347_v60  ;;  %v179_v62 = vpop.trf.xlu0  ;;  %v356_v63 = vsub.f32 %v3870_v54, %v355_v58 }
 0x176   : > { %v211_v0 = vsel %vm188_vm0, %v179_v62, 0 }
 0x177   : > { %v365_v1 = vand.u32 4294901760, %v3880_v61  ;;  %v3887_v3 = vand.u32 4294901760, %v211_v0  ;;  %v357_v4 = vand.u32 4294901760, %v356_v63 }
 0x179   : > { %v3890_v5 = vsub.f32 %v211_v0, %v3887_v3  ;;  %2841 = vmatmul.mubr.f32.gmra.mrb[4].mxu0 %v357_v4  ;;  %v180_v6 = vpop.trf.xlu0  ;;  %v366_v7 = vsub.f32 %v3880_v61, %v365_v1 }
 0x17a   : > { %v214_v8 = vsel %vm188_vm0, %v180_v6, 0 }
 0x17b   : > { %v375_v9 = vand.u32 4294901760, %v3890_v5  ;;  %v3897_v10 = vand.u32 4294901760, %v214_v8  ;;  %v367_v11 = vand.u32 4294901760, %v366_v7 }
 0x17d   : > { %v3900_v15 = vsub.f32 %v214_v8, %v3897_v10  ;;  %2843 = vmatprep.mubr.f32.mxu0 %v367_v11  ;;  %v181_v16 = vpop.trf.xlu0  ;;  %v376_v18 = vsub.f32 %v3890_v5, %v375_v9 }
 0x17e   : > { %v217_v19 = vsel %vm188_vm0, %v181_v16, 0 }
 0x17f   : > { %v385_v22 = vand.u32 4294901760, %v3900_v15  ;;  %v3907_v23 = vand.u32 4294901760, %v217_v19  ;;  %v377_v27 = vand.u32 4294901760, %v376_v18 }
 0x181   : > { %v3910_v28 = vsub.f32 %v217_v19, %v3907_v23  ;;  %2844 = vmatmul.mubr.f32.gmra.mrb[6].mxu0 %v377_v27  ;;  %v182_v29 = vpop.trf.xlu0  ;;  %v386_v32 = vsub.f32 %v3900_v15, %v385_v22 }
 0x182   : > { %v220_v34 = vsel %vm188_vm0, %v182_v29, 0 }
 0x183   : > { %v395_v35 = vand.u32 4294901760, %v3910_v28  ;;  %v3917_v36 = vand.u32 4294901760, %v220_v34  ;;  %v387_v39 = vand.u32 4294901760, %v386_v32  ;;  %v3957_v32 = vand.u32 4294901760, %v3806_v12 }
 0x185   : > { %v3920_v41 = vsub.f32 %v220_v34, %v3917_v36  ;;  %2846 = vmatprep.mubr.f32.mxu0 %v387_v39  ;;  %v183_v42 = vpop.trf.xlu0  ;;  %v396_v43 = vsub.f32 %v3910_v28, %v395_v35 }
 0x186   : > { %v223_v46 = vsel %vm188_vm0, %v183_v42, 0 }
 0x187   : > { %v405_v48 = vand.u32 4294901760, %v3920_v41  ;;  %v3927_v49 = vand.u32 4294901760, %v223_v46  ;;  %v397_v50 = vand.u32 4294901760, %v396_v43 }
 0x189   : > { %v3930_v53 = vsub.f32 %v223_v46, %v3927_v49  ;;  %2847 = vmatmul.mubr.f32.gmra.mrb[8].mxu0 %v397_v50  ;;  %v184_v55 = vpop.trf.xlu0  ;;  %v406_v56 = vsub.f32 %v3920_v41, %v405_v48 }
 0x18a   : > { %v226_v57 = vsel %vm188_vm0, %v184_v55, 0 }
 0x18b   : > { %v415_v60 = vand.u32 4294901760, %v3930_v53  ;;  %v3937_v62 = vand.u32 4294901760, %v226_v57  ;;  %v407_v63 = vand.u32 4294901760, %v406_v56  ;;  %v3971_v56 = vsub.f32 %v3806_v12, %v3957_v32 }
 0x18d   : > { %v3940_v0 = vsub.f32 %v226_v57, %v3937_v62  ;;  %2849 = vmatprep.mubr.f32.mxu0 %v407_v63  ;;  %v185_v4 = vpop.trf.xlu0  ;;  %v416_v6 = vsub.f32 %v3930_v53, %v415_v60  ;;  %v3985_v12 = vand.u32 4294901760, %v3971_v56 }
 0x18e   : > { %v229_v7 = vsel %vm188_vm0, %v185_v4, 0 }
 0x18f   : > { %v425_v8 = vand.u32 4294901760, %v3940_v0  ;;  %v3947_v11 = vand.u32 4294901760, %v229_v7  ;;  %v417_v16 = vand.u32 4294901760, %v416_v6 }
 0x191   : > { %v3950_v18 = vsub.f32 %v229_v7, %v3947_v11  ;;  %2850 = vmatmul.mubr.f32.gmra.mrb[10].mxu0 %v417_v16  ;;  %v186_v19 = vpop.trf.xlu0  ;;  %v426_v27 = vsub.f32 %v3940_v0, %v425_v8 }
 0x192   : > { %v232_v29 = vsel %vm188_vm0, %v186_v19, 0 }
 0x193   : > { %v435_v34 = vand.u32 4294901760, %v3950_v18  ;;  %v3960_v39 = vand.u32 4294901760, %v232_v29  ;;  %v427_v42 = vand.u32 4294901760, %v426_v27 }
 0x195   : > { %v3963_v43 = vsub.f32 %v232_v29, %v3960_v39  ;;  %2852 = vmatprep.mubr.f32.mxu0 %v427_v42  ;;  %v187_v46 = vpop.trf.xlu0  ;;  %v436_v50 = vsub.f32 %v3950_v18, %v435_v34  ;;  %v1426_v42 = vsub.f32 %v3971_v56, %v3985_v12 }
 0x196   : > { %v235_v55 = vsel %vm188_vm0, %v187_v46, 0 }
 0x197   : > { %v3973_v57 = vand.u32 4294901760, %v235_v55  ;;  %v437_v63 = vand.u32 4294901760, %v436_v50  ;;  %v445_v4 = vand.u32 4294901760, %v3963_v43 }
 0x199   : > { %v3977_v6 = vsub.f32 %v235_v55, %v3973_v57  ;;  %2853 = vmatmul.mubr.f32.gmra.mrb[12].mxu0 %v437_v63  ;;  %v446_v7 = vsub.f32 %v3963_v43, %v445_v4 }
 0x19a   : > { %2860 = vmatprep.mubr.f32.mxu0 %v3819_v20 }
 0x19b   : > { %v455_v16 = vand.u32 4294901760, %v3977_v6  ;;  %v447_v19 = vand.u32 4294901760, %v446_v7 }
 0x19d   : > { %2861 = vmatmul.mubr.f32.vlgmr.msra.gmra.mrb[0].mxu0 %v3825_v24  ;;  %2855 = vmatprep.mubr.f32.mxu1 %v447_v19  ;;  %v456_v27 = vsub.f32 %v3977_v6, %v455_v16 }
 0x19e   : > { %2885 = vmatpush3.msra.mxu0 %v3810_v13  ;;  %2863 = vmatprep.mubr.f32.mxu0 %v3836_v31  ;;  %v4002_v13 = vand.u32 4294901760, %v1426_v42 }
 0x19f   : > { %v457_v29 = vand.u32 4294901760, %v456_v27  ;;  %2910 = vmatprep.subr.mxu0 %v3800_v2 }
 0x1a1   : > { %2856 = vmatmul.mubr.f32.vlgmr.msra.gmra.mrb[0].mxu1 %v457_v29  ;;  %2864 = vmatmul.mubr.f32.gmra.mrb[2].mxu0 %v3846_v38 }
 0x1a2   : > { %2989 = vmatpush3.xpose.msra.mxu1 %v3957_v32  ;;  %2866 = vmatprep.mubr.f32.mxu0 %v3856_v45 }
 0x1a3   : > { %2990 = vmatprep.mubr.msk.f32.mxu1 %vm3664_vm1, %v3663_v17  ;;  %2993 = vmatprep.subr.mxu1 %v3663_v17 }
 0x1a5   : > { %2867 = vmatmul.mubr.f32.gmra.mrb[4].mxu0 %v3867_v52  ;;  %2991 = vmatmul.mubr.f32.vlgmr.msra.gmra.mrb[2].mxu1 %v4002_v13 }
 0x1a6   : > { %2994 = vmatpush3.xpose.msra.mxu1 %v4002_v13  ;;  %2869 = vmatprep.mubr.f32.mxu0 %v3877_v59 }
 0x1a7   : > { %2995 = vmatprep.mubr.msk.f32.mxu1 %vm3664_vm1, %v3663_v17  ;;  %2998 = vmatprep.subr.mxu1 %v3663_v17 }
 0x1a9   : > { %2870 = vmatmul.mubr.f32.gmra.mrb[6].mxu0 %v3887_v3 }
 0x1aa   : > { %2872 = vmatprep.mubr.f32.mxu0 %v3897_v10 }
 0x1ad   : > { %2873 = vmatmul.mubr.f32.gmra.mrb[8].mxu0 %v3907_v23  ;;  %2996 = vmatmul.mubr.f32.vlgmr.msra.gmra.mrb[2].mxu1 %v3957_v32 }
 0x1ae   : > { %2999 = vmatpush3.xpose.msra.mxu1 %v3971_v56  ;;  %2875 = vmatprep.mubr.f32.mxu0 %v3917_v36 }
 0x1af   : > { %3000 = vmatprep.mubr.msk.f32.mxu1 %vm3664_vm1, %v3663_v17  ;;  %3003 = vmatprep.subr.mxu1 %v3663_v17 }
 0x1b1   : > { %2876 = vmatmul.mubr.f32.gmra.mrb[10].mxu0 %v3927_v49 }
 0x1b2   : > { %2878 = vmatprep.mubr.f32.mxu0 %v3937_v62 }
 0x1b5   : > { %2879 = vmatmul.mubr.f32.gmra.mrb[12].mxu0 %v3947_v11  ;;  %3001 = vmatmul.mubr.f32.vlgmr.msra.gmra.mrb[2].mxu1 %v3971_v56 }
 0x1b6   : > { %3004 = vmatpush3.xpose.msra.mxu1 %v3957_v32  ;;  %2881 = vmatprep.mubr.f32.mxu0 %v3960_v39 }
 0x1b7   : > { %3005 = vmatprep.mubr.msk.f32.mxu1 %vm3664_vm1, %v3663_v17  ;;  %3008 = vmatprep.subr.mxu1 %v3663_v17 }
 0x1b9   : > { %2882 = vmatmul.mubr.f32.gmra.mrb[14].mxu0 %v3973_v57 }
 0x1ba   : > { %2886 = vmatprep.mubr.f32.mxu0 %v3822_v21  ;;  %v3666_v21 = vmov -inf  }
 0x1bb   : > { %1352 = vst.msk [vmem:[#allocation6] sm:$0xff] %vm188_vm0, %v3666_v21 }
 0x1bd   : > { %2887 = vmatmul.mubr.f32.vlgmr.msra.gmra.mrb[0].mxu0 %v3829_v26  ;;  %3006 = vmatmul.mubr.f32.vlgmr.msra.gmra.mrb[2].mxu1 %v3985_v12 }
 0x1be   : > { %2911 = vmatpush3.msra.mxu0 %v3800_v2  ;;  %3009 = vmatpush3.xpose.msra.mxu1 %v3985_v12 }
 0x1bf   : > { %2889 = vmatprep.mubr.f32.mxu0 %v3839_v33  ;;  %3010 = vmatprep.mubr.msk.f32.mxu1 %vm3664_vm1, %v3663_v17 }
 0x1c0   : > { %3013 = vmatprep.subr.mxu1 %v3663_v17  ;;  %2936 = vmatprep.subr.mxu0 %v3813_v14 }
 0x1c1   : > { %2890 = vmatmul.mubr.f32.gmra.mrb[2].mxu0 %v3849_v40 }
 0x1c2   : > { %2892 = vmatprep.mubr.f32.mxu0 %v3860_v47  ;;  %v1807_v26 = vld [vmem:[#allocation6] sm:$0xff] }
 0x1c5   : > { %2893 = vmatmul.mubr.f32.gmra.mrb[4].mxu0 %v3870_v54  ;;  %3011 = vmatmul.mubr.f32.vlgmr.msra.gmra.mrb[2].mxu1 %v3957_v32 }
 0x1c6   : > { %3014 = vmatpush3.xpose.msra.mxu1 %v3957_v32  ;;  %2895 = vmatprep.mubr.f32.mxu0 %v3880_v61 }
 0x1c7   : > { %3015 = vmatprep.mubr.msk.f32.mxu1 %vm3664_vm1, %v3663_v17 }
 0x1c9   : > { %2896 = vmatmul.mubr.f32.gmra.mrb[6].mxu0 %v3890_v5 }
 0x1ca   : > { %2898 = vmatprep.mubr.f32.mxu0 %v3900_v15 }
 0x1cd   : > { %2899 = vmatmul.mubr.f32.gmra.mrb[8].mxu0 %v3910_v28  ;;  %3016 = vmatmul.mubr.f32.vlgmr.msra.gmra.mrb[2].mxu1 %v3957_v32 }
 0x1ce   : > { %2901 = vmatprep.mubr.f32.mxu0 %v3920_v41  ;;  %3085 = vmatprep.mubr.msk.f32.mxu1 %vm3664_vm1, %v3663_v17 }
 0x1d1   : > { %2902 = vmatmul.mubr.f32.gmra.mrb[10].mxu0 %v3930_v53 }
 0x1d2   : > { %2904 = vmatprep.mubr.f32.mxu0 %v3940_v0 }
 0x1d5   : > { %2905 = vmatmul.mubr.f32.gmra.mrb[12].mxu0 %v3950_v18 }
 0x1d6   : > { %2907 = vmatprep.mubr.f32.mxu0 %v3963_v43 }
 0x1d9   : > { %2908 = vmatmul.mubr.f32.gmra.mrb[14].mxu0 %v3977_v6 }
 0x1da   : > { %2912 = vmatprep.mubr.f32.mxu0 %v305_v25 }
 0x1dd   : > { %2913 = vmatmul.mubr.f32.vlgmr.msra.gmra.mrb[0].mxu0 %v315_v30 }
 0x1de   : > { %2937 = vmatpush3.msra.mxu0 %v3813_v14  ;;  %2915 = vmatprep.mubr.f32.mxu0 %v325_v37  ;;  %v3665_v14 = vmov inf  }
 0x1df   : > { %2962 = vmatprep.subr.mxu0 %v3800_v2  ;;  %1351 = vst.msk [vmem:[#allocation5] sm:$0xff] %vm188_vm0, %v3665_v14 }
 0x1e1   : > { %2916 = vmatmul.mubr.f32.gmra.mrb[2].mxu0 %v335_v44 }
 0x1e2   : > { %2918 = vmatprep.mubr.f32.mxu0 %v345_v51 }
 0x1e5   : > { %2919 = vmatmul.mubr.f32.gmra.mrb[4].mxu0 %v355_v58 }
 0x1e6   : > { %2921 = vmatprep.mubr.f32.mxu0 %v365_v1  ;;  %v1803_v25 = vld [vmem:[#allocation5] sm:$0xff] }
 0x1e9   : > { %2922 = vmatmul.mubr.f32.gmra.mrb[6].mxu0 %v375_v9 }
 0x1ea   : > { %2924 = vmatprep.mubr.f32.mxu0 %v385_v22 }
 0x1ed   : > { %2925 = vmatmul.mubr.f32.gmra.mrb[8].mxu0 %v395_v35 }
 0x1ee   : > { %2927 = vmatprep.mubr.f32.mxu0 %v405_v48 }
 0x1f1   : > { %2928 = vmatmul.mubr.f32.gmra.mrb[10].mxu0 %v415_v60 }
 0x1f2   : > { %2930 = vmatprep.mubr.f32.mxu0 %v425_v8 }
 0x1f5   : > { %2931 = vmatmul.mubr.f32.gmra.mrb[12].mxu0 %v435_v34 }
 0x1f6   : > { %2933 = vmatprep.mubr.f32.mxu0 %v445_v4 }
 0x1f9   : > { %2934 = vmatmul.mubr.f32.gmra.mrb[14].mxu0 %v455_v16 }
 0x1fa   : > { %2938 = vmatprep.mubr.f32.mxu0 %v3819_v20 }
 0x1fd   : > { %2939 = vmatmul.mubr.f32.vlgmr.msra.gmra.mrb[0].mxu0 %v3825_v24 }
 0x1fe   : > { %2963 = vmatpush3.msra.mxu0 %v3800_v2  ;;  %2941 = vmatprep.mubr.f32.mxu0 %v3836_v31 }
 0x201   : > { %2942 = vmatmul.mubr.f32.gmra.mrb[2].mxu0 %v3846_v38 }
 0x202   : > { %2944 = vmatprep.mubr.f32.mxu0 %v3856_v45 }
 0x205   : > { %2945 = vmatmul.mubr.f32.gmra.mrb[4].mxu0 %v3867_v52 }
 0x206   : > { %2947 = vmatprep.mubr.f32.mxu0 %v3877_v59 }
 0x209   : > { %2948 = vmatmul.mubr.f32.gmra.mrb[6].mxu0 %v3887_v3 }
 0x20a   : > { %2950 = vmatprep.mubr.f32.mxu0 %v3897_v10 }
 0x20d   : > { %2951 = vmatmul.mubr.f32.gmra.mrb[8].mxu0 %v3907_v23 }
 0x20e   : > { %2953 = vmatprep.mubr.f32.mxu0 %v3917_v36 }
 0x211   : > { %2954 = vmatmul.mubr.f32.gmra.mrb[10].mxu0 %v3927_v49 }
 0x212   : > { %2956 = vmatprep.mubr.f32.mxu0 %v3937_v62 }
 0x215   : > { %2957 = vmatmul.mubr.f32.gmra.mrb[12].mxu0 %v3947_v11 }
 0x216   : > { %2959 = vmatprep.mubr.f32.mxu0 %v3960_v39 }
 0x219   : > { %2960 = vmatmul.mubr.f32.gmra.mrb[14].mxu0 %v3973_v57 }
 0x21a   : > { %2964 = vmatprep.mubr.f32.mxu0 %v3819_v20 }
 0x21d   : > { %2965 = vmatmul.mubr.f32.vlgmr.msra.gmra.mrb[0].mxu0 %v3825_v24  ;;  %v3667_v24 = vmov 0.0|0.0  }
 0x21e   : > { %2967 = vmatprep.mubr.f32.mxu0 %v3836_v31  ;;  %3228 = vmatprep.subr.bf16.mxu0 %v3667_v24 }
 0x21f   : > { %3252 = vmatprep.subr.bf16.mxu1 %v3667_v24 }
 0x221   : > { %2968 = vmatmul.mubr.f32.gmra.mrb[2].mxu0 %v3846_v38 }
 0x222   : > { %2970 = vmatprep.mubr.f32.mxu0 %v3856_v45 }
 0x225   : > { %2971 = vmatmul.mubr.f32.gmra.mrb[4].mxu0 %v3867_v52 }
 0x226   : > { %2973 = vmatprep.mubr.f32.mxu0 %v3877_v59 }
 0x229   : > { %2974 = vmatmul.mubr.f32.gmra.mrb[6].mxu0 %v3887_v3 }
 0x22a   : > { %2976 = vmatprep.mubr.f32.mxu0 %v3897_v10 }
 0x22d   : > { %2977 = vmatmul.mubr.f32.gmra.mrb[8].mxu0 %v3907_v23 }
 0x22e   : > { %2979 = vmatprep.mubr.f32.mxu0 %v3917_v36 }
 0x231   : > { %2980 = vmatmul.mubr.f32.gmra.mrb[10].mxu0 %v3927_v49 }
 0x232   : > { %2982 = vmatprep.mubr.f32.mxu0 %v3937_v62 }
 0x235   : > { %2983 = vmatmul.mubr.f32.gmra.mrb[12].mxu0 %v3947_v11 }
 0x236   : > { %2985 = vmatprep.mubr.f32.mxu0 %v3960_v39 }
 0x239   : > { %2986 = vmatmul.mubr.f32.gmra.mrb[14].mxu0 %v3973_v57 }
 0x23a   : > { %3050 = vmatprep.mubr.msk.f32.mxu0 %vm3664_vm1, %v3663_v17 }
 0x274   : > { %v4131_v2 = vpop.f32.mrb[0].mxu1 }
 0x275   : > { %v4133_v20 = vpop.f32.mrb[1].mxu1 }
 0x2a0   : > { %v1799_v30 = vpop.f32.mrb[2].mxu1 }
 0x2a1   : > { %v1804_v31 = vmin.f32 %v1803_v25, %v1799_v30  ;;  %v1808_v33 = vmax.f32 %v1807_v26, %v1799_v30  ;;  %v3017_v37 = vpop.f32.mrb[3].mxu1 }
 0x2a3   : > { %1806 = vst.msk [vmem:[#allocation5] sm:$0xff] %vm188_vm0, %v1804_v31  ;;  %1809 = vst.msk [vmem:[#allocation6] sm:$0xff] %vm188_vm0, %v1808_v33 }
 0x2aa   : > { %v1813_v38 = vld [vmem:[#allocation5] sm:$0xff]  ;;  %v1825_v44 = vld [vmem:[#allocation6] sm:$0xff] }
 0x2ab   : > { %v1814_v40 = vsel %vm188_vm0, %v1813_v38, inf  ;;  %v1826_v45 = vsel %vm188_vm0, %v1825_v44, -inf }
 0x2ac   : > { %1815 = vmin.xlane.f32.xlu1 %v1814_v40 }
 0x2b0   : > { %1827 = vmax.xlane.f32.xlu1 %v1826_v45 }
 0x2f0   : > { %v2966_v47 = vpop.f32.mrb[0].mxu0 }
 0x2f1   : > { %v1861_v51 = vand.u32 4294901760, %v2966_v47  ;;  %v1234_v52 = vpop.f32.mrb[1].mxu0 }
 0x2f2   : > { %v1858_v54 = vand.u32 4294901760, %v1234_v52 }
 0x2f3   : > { %v4141_v58 = vsub.f32 %v2966_v47, %v1861_v51 }
 0x2f4   : > { %v4143_v59 = vpack.c.bf16 %v1861_v51, %v1858_v54  ;;  %v4145_v61 = vsub.f32 %v1234_v52, %v1858_v54  ;;  %v2969_v1 = vpop.f32.mrb[2].mxu0 }
 0x2f5   : > { %v1958_v3 = vand.u32 4294901760, %v4141_v58  ;;  %v1867_v5 = vand.u32 4294901760, %v2969_v1  ;;  %v1246_v9 = vpop.f32.mrb[3].mxu0 }
 0x2f6   : > { %v1951_v10 = vand.u32 4294901760, %v4145_v61  ;;  %v3277_v15 = vpack.c.bf16 %v4141_v58, %v4145_v61  ;;  %v1864_v22 = vand.u32 4294901760, %v1246_v9  ;;  %3230 = vmatpush3.bf16.msra.mxu0 %v4143_v59 }
 0x2f7   : > { %v1959_v23 = vsub.f32 %v4141_v58, %v1958_v3  ;;  %v4153_v28 = vsub.f32 %v2969_v1, %v1867_v5  ;;  %3231 = vmatprep.subr.bf16.mxu0 %v3667_v24 }
 0x2f8   : > { %v1952_v35 = vsub.f32 %v4145_v61, %v1951_v10  ;;  %v4157_v36 = vpack.c.bf16 %v1867_v5, %v1864_v22  ;;  %v4159_v41 = vsub.f32 %v1246_v9, %v1864_v22  ;;  %v2972_v48 = vpop.f32.mrb[4].mxu0  ;;  %v4161_v49 = vpack.c.bf16 %v1958_v3, %v1951_v10 }
 0x2f9   : > { %v1960_v53 = vand.u32 4294901760, %v1959_v23  ;;  %v1972_v60 = vand.u32 4294901760, %v4153_v28  ;;  %v1873_v62 = vand.u32 4294901760, %v2972_v48  ;;  %v1258_v0 = vpop.f32.mrb[5].mxu0 }
 0x2fa   : > { %v1953_v8 = vand.u32 4294901760, %v1952_v35  ;;  %v1965_v11 = vand.u32 4294901760, %v4159_v41  ;;  %v3280_v18 = vpack.c.bf16 %v4153_v28, %v4159_v41  ;;  %v1870_v34 = vand.u32 4294901760, %v1258_v0  ;;  %3233 = vmatpush3.bf16.msra.mxu0 %v4157_v36 }
 0x2fb   : > { %v1973_v39 = vsub.f32 %v4153_v28, %v1972_v60  ;;  %v4169_v43 = vsub.f32 %v2972_v48, %v1873_v62  ;;  %3234 = vmatprep.subr.bf16.mxu0 %v3667_v24 }
 0x2fc   : > { %v1966_v46 = vsub.f32 %v4159_v41, %v1965_v11  ;;  %v4173_v50 = vpack.c.bf16 %v1873_v62, %v1870_v34  ;;  %v4175_v55 = vsub.f32 %v1258_v0, %v1870_v34  ;;  %v2975_v57 = vpop.f32.mrb[6].mxu0  ;;  %v3253_v63 = vpack.c.bf16 %v1960_v53, %v1953_v8 }
 0x2fd   : > { %v1974_v4 = vand.u32 4294901760, %v1973_v39  ;;  %v1986_v6 = vand.u32 4294901760, %v4169_v43  ;;  %v1879_v7 = vand.u32 4294901760, %v2975_v57  ;;  %v1270_v16 = vpop.f32.mrb[7].mxu0  ;;  %v4178_v19 = vpack.c.bf16 %v1972_v60, %v1965_v11 }
 0x2fe   : > { %v1967_v27 = vand.u32 4294901760, %v1966_v46  ;;  %v1979_v29 = vand.u32 4294901760, %v4175_v55  ;;  %v3283_v42 = vpack.c.bf16 %v4169_v43, %v4175_v55  ;;  %v1876_v14 = vand.u32 4294901760, %v1270_v16  ;;  %3236 = vmatpush3.bf16.msra.mxu0 %v4173_v50  ;;  %3254 = vmatpush3.bf16.msra.mxu1 %v3253_v63 }
 0x2ff   : > { %v1987_v21 = vsub.f32 %v4169_v43, %v1986_v6  ;;  %v4185_v25 = vsub.f32 %v2975_v57, %v1879_v7  ;;  %3237 = vmatprep.subr.bf16.mxu0 %v3667_v24  ;;  %3255 = vmatprep.subr.bf16.mxu1 %v3667_v24 }
 0x300   : > { %v1980_v26 = vsub.f32 %v4175_v55, %v1979_v29  ;;  %v4190_v30 = vpack.c.bf16 %v1879_v7, %v1876_v14  ;;  %v4192_v31 = vsub.f32 %v1270_v16, %v1876_v14  ;;  %v2978_v33 = vpop.f32.mrb[8].mxu0  ;;  %v3256_v37 = vpack.c.bf16 %v1974_v4, %v1967_v27 }
 0x301   : > { %v1988_v38 = vand.u32 4294901760, %v1987_v21  ;;  %v2000_v40 = vand.u32 4294901760, %v4185_v25  ;;  %v1885_v44 = vand.u32 4294901760, %v2978_v33  ;;  %v1282_v45 = vpop.f32.mrb[9].mxu0  ;;  %v4195_v47 = vpack.c.bf16 %v1986_v6, %v1979_v29 }
 0x302   : > { %v1981_v51 = vand.u32 4294901760, %v1980_v26  ;;  %v1993_v52 = vand.u32 4294901760, %v4192_v31  ;;  %v3286_v54 = vpack.c.bf16 %v4185_v25, %v4192_v31  ;;  %v1882_v1 = vand.u32 4294901760, %v1282_v45  ;;  %3239 = vmatpush3.bf16.msra.mxu0 %v4190_v30  ;;  %3257 = vmatpush3.bf16.msra.mxu1 %v3256_v37 }
 0x303   : > { %v2001_v3 = vsub.f32 %v4185_v25, %v2000_v40  ;;  %v4202_v5 = vsub.f32 %v2978_v33, %v1885_v44  ;;  %3240 = vmatprep.subr.bf16.mxu0 %v3667_v24  ;;  %3258 = vmatprep.subr.bf16.mxu1 %v3667_v24 }
 0x304   : > { %v1994_v9 = vsub.f32 %v4192_v31, %v1993_v52  ;;  %v4207_v10 = vpack.c.bf16 %v1885_v44, %v1882_v1  ;;  %v4209_v22 = vsub.f32 %v1282_v45, %v1882_v1  ;;  %v2981_v23 = vpop.f32.mrb[10].mxu0  ;;  %v3259_v35 = vpack.c.bf16 %v1988_v38, %v1981_v51 }
 0x305   : > { %v2002_v48 = vand.u32 4294901760, %v2001_v3  ;;  %v2014_v53 = vand.u32 4294901760, %v4202_v5  ;;  %v1891_v60 = vand.u32 4294901760, %v2981_v23  ;;  %v1294_v62 = vpop.f32.mrb[11].mxu0  ;;  %v4212_v0 = vpack.c.bf16 %v2000_v40, %v1993_v52 }
 0x306   : > { %v1995_v8 = vand.u32 4294901760, %v1994_v9  ;;  %v2007_v11 = vand.u32 4294901760, %v4209_v22  ;;  %v3289_v34 = vpack.c.bf16 %v4202_v5, %v4209_v22  ;;  %v1888_v39 = vand.u32 4294901760, %v1294_v62  ;;  %3242 = vmatpush3.bf16.msra.mxu0 %v4207_v10  ;;  %3260 = vmatpush3.bf16.msra.mxu1 %v3259_v35 }
 0x307   : > { %v2015_v46 = vsub.f32 %v4202_v5, %v2014_v53  ;;  %v4219_v57 = vsub.f32 %v2981_v23, %v1891_v60  ;;  %3243 = vmatprep.subr.bf16.mxu0 %v3667_v24  ;;  %3261 = vmatprep.subr.bf16.mxu1 %v3667_v24 }
 0x308   : > { %v2008_v63 = vsub.f32 %v4209_v22, %v2007_v11  ;;  %v4224_v4 = vpack.c.bf16 %v1891_v60, %v1888_v39  ;;  %v4226_v6 = vsub.f32 %v1294_v62, %v1888_v39  ;;  %v2984_v7 = vpop.f32.mrb[12].mxu0  ;;  %v3262_v16 = vpack.c.bf16 %v2002_v48, %v1995_v8 }
 0x309   : > { %v2016_v27 = vand.u32 4294901760, %v2015_v46  ;;  %v2028_v29 = vand.u32 4294901760, %v4219_v57  ;;  %v1897_v14 = vand.u32 4294901760, %v2984_v7  ;;  %v1306_v21 = vpop.f32.mrb[13].mxu0  ;;  %v4229_v26 = vpack.c.bf16 %v2014_v53, %v2007_v11 }
 0x30a   : > { %v2009_v33 = vand.u32 4294901760, %v2008_v63  ;;  %v2021_v37 = vand.u32 4294901760, %v4226_v6  ;;  %v3292_v38 = vpack.c.bf16 %v4219_v57, %v4226_v6  ;;  %v1894_v40 = vand.u32 4294901760, %v1306_v21  ;;  %3245 = vmatpush3.bf16.msra.mxu0 %v4224_v4  ;;  %3263 = vmatpush3.bf16.msra.mxu1 %v3262_v16 }
 0x30b   : > { %v2029_v44 = vsub.f32 %v4219_v57, %v2028_v29  ;;  %v4236_v45 = vsub.f32 %v2984_v7, %v1897_v14  ;;  %3246 = vmatprep.subr.bf16.mxu0 %v3667_v24  ;;  %3264 = vmatprep.subr.bf16.mxu1 %v3667_v24 }
 0x30c   : > { %v2022_v51 = vsub.f32 %v4226_v6, %v2021_v37  ;;  %v4241_v52 = vpack.c.bf16 %v1897_v14, %v1894_v40  ;;  %v2034_v1 = vsub.f32 %v1306_v21, %v1894_v40  ;;  %v2987_v3 = vpop.f32.mrb[14].mxu0  ;;  %v3265_v9 = vpack.c.bf16 %v2016_v27, %v2009_v33 }
 0x30d   : > { %v2030_v23 = vand.u32 4294901760, %v2029_v44  ;;  %v2042_v35 = vand.u32 4294901760, %v4236_v45  ;;  %v3374_v48 = vadd.f32 %v2987_v3, %v4131_v2  ;;  %v1318_v53 = vpop.f32.mrb[15].mxu0  ;;  %v4245_v60 = vpack.c.bf16 %v2028_v29, %v2021_v37 }
 0x30e   : > { %v2023_v62 = vand.u32 4294901760, %v2022_v51  ;;  %v2035_v8 = vand.u32 4294901760, %v2034_v1  ;;  %v3295_v11 = vpack.c.bf16 %v4236_v45, %v2034_v1  ;;  %v3375_v39 = vadd.f32 %v1318_v53, %v4133_v20  ;;  %3248 = vmatpush3.bf16.msra.mxu0 %v4241_v52  ;;  %3266 = vmatpush3.bf16.msra.mxu1 %v3265_v9 }
 0x30f   : > { %v2043_v46 = vsub.f32 %v4236_v45, %v2042_v35  ;;  %v1903_v63 = vand.u32 4294901760, %v3374_v48  ;;  %3267 = vmatprep.subr.bf16.mxu1 %v3667_v24  ;;  %3249 = vmatprep.subr.bf16.mxu0 %v3667_v24 }
 0x310   : > { %v2036_v2 = vsub.f32 %v2034_v1, %v2035_v8  ;;  %v1900_v7 = vand.u32 4294901760, %v3375_v39  ;;  %v3268_v16 = vpack.c.bf16 %v2030_v23, %v2023_v62  ;;  %v4253_v27 = vpack.c.bf16 %v2042_v35, %v2035_v8 }
 0x311   : > { %v2044_v29 = vand.u32 4294901760, %v2043_v46  ;;  %v2055_v14 = vsub.f32 %v3374_v48, %v1903_v63 }
 0x312   : > { %v2037_v21 = vand.u32 4294901760, %v2036_v2  ;;  %v4255_v33 = vpack.c.bf16 %v1903_v63, %v1900_v7  ;;  %v2048_v20 = vsub.f32 %v3375_v39, %v1900_v7  ;;  %3269 = vmatpush3.bf16.msra.mxu1 %v3268_v16 }
 0x313   : > { %v2056_v37 = vand.u32 4294901760, %v2055_v14  ;;  %3270 = vmatprep.subr.bf16.mxu1 %v3667_v24 }
 0x314   : > { %v2049_v40 = vand.u32 4294901760, %v2048_v20  ;;  %v3298_v44 = vpack.c.bf16 %v2055_v14, %v2048_v20  ;;  %3251 = vmatpush3.bf16.msra.mxu0 %v4255_v33  ;;  %v3271_v45 = vpack.c.bf16 %v2044_v29, %v2037_v21 }
 0x315   : > { %v2057_v51 = vsub.f32 %v2055_v14, %v2056_v37 }
 0x316   : > { %v2050_v1 = vsub.f32 %v2048_v20, %v2049_v40  ;;  %3272 = vmatpush3.bf16.msra.mxu1 %v3271_v45  ;;  %v4259_v3 = vpack.c.bf16 %v2056_v37, %v2049_v40 }
 0x317   : > { %v2058_v9 = vand.u32 4294901760, %v2057_v51  ;;  %3051 = vmatmul.mubr.f32.vlgmr.msra.gmra.mrb[16].mxu0 %v4002_v13  ;;  %3273 = vmatprep.subr.bf16.mxu1 %v3667_v24 }
 0x318   : > { %v2051_v23 = vand.u32 4294901760, %v2050_v1 }
 0x31a   : > { %v3274_v35 = vpack.c.bf16 %v2058_v9, %v2051_v23 }
 0x31c   : > { %3275 = vmatpush3.bf16.msra.mxu1 %v3274_v35 }
 0x31d   : > { %3276 = vmatprep.subr.bf16.mxu1 %v3667_v24 }
 0x31f   : > { %3086 = vmatmul.mubr.f32.vlgmr.msra.gmra.mrb[4].mxu1 %v3957_v32 }
 0x320   : > { %3278 = vmatpush3.bf16.msra.mxu1 %v3277_v15  ;;  %3120 = vmatprep.mubr.msk.f32.mxu1 %vm3664_vm1, %v3663_v17 }
 0x321   : > { %3279 = vmatprep.subr.bf16.mxu1 %v3667_v24 }
 0x324   : > { %3281 = vmatpush3.bf16.msra.mxu1 %v3280_v18 }
 0x325   : > { %3282 = vmatprep.subr.bf16.mxu1 %v3667_v24 }
 0x328   : > { %3284 = vmatpush3.bf16.msra.mxu1 %v3283_v42 }
 0x329   : > { %3285 = vmatprep.subr.bf16.mxu1 %v3667_v24 }
 0x32c   : > { %3287 = vmatpush3.bf16.msra.mxu1 %v3286_v54 }
 0x32d   : > { %3288 = vmatprep.subr.bf16.mxu1 %v3667_v24 }
 0x330   : > { %3290 = vmatpush3.bf16.msra.mxu1 %v3289_v34 }
 0x331   : > { %3291 = vmatprep.subr.bf16.mxu1 %v3667_v24 }
 0x334   : > { %3293 = vmatpush3.bf16.msra.mxu1 %v3292_v38 }
 0x335   : > { %3294 = vmatprep.subr.bf16.mxu1 %v3667_v24 }
 0x338   : > { %3296 = vmatpush3.bf16.msra.mxu1 %v3295_v11 }
 0x339   : > { %v1816_v13 = vpop.xlane.xlu1 %1815  ;;  %3297 = vmatprep.subr.bf16.mxu1 %v3667_v24 }
 0x33a   : > { %v1817_v58 = vrot.slane %v1816_v13, 4 }
 0x33c   : > { %v1818_v61 = vmin.f32 %v1816_v13, %v1817_v58  ;;  %3299 = vmatpush3.bf16.msra.mxu1 %v3298_v44 }
 0x33d   : > { %v1828_v15 = vpop.xlane.xlu1 %1827  ;;  %3300 = vmatprep.subr.bf16.mxu1 %v3667_v24 }
 0x33e   : > { %v1819_v28 = vrot.slane %v1818_v61, 2  ;;  %v1829_v41 = vrot.slane %v1828_v15, 4 }
 0x33f   : > { %3121 = vmatmul.mubr.f32.vlgmr.msra.gmra.mrb[4].mxu1 %v3971_v56 }
 0x340   : > { %v1830_v18 = vmax.f32 %v1828_v15, %v1829_v41  ;;  %3302 = vmatpush3.bf16.msra.mxu1 %v4143_v59  ;;  %v1820_v43 = vmin.f32 %v1818_v61, %v1819_v28  ;;  %3155 = vmatprep.mubr.msk.f32.mxu1 %vm3664_vm1, %v3663_v17 }
 0x341   : > { %3303 = vmatprep.subr.bf16.mxu1 %v3667_v24 }
 0x342   : > { %v1831_v55 = vrot.slane %v1830_v18, 2  ;;  %v1821_v42 = vrot.slane %v1820_v43, 1 }
 0x344   : > { %v1832_v25 = vmax.f32 %v1830_v18, %v1831_v55  ;;  %3305 = vmatpush3.bf16.msra.mxu1 %v4157_v36  ;;  %v1822_v31 = vmin.f32 %v1820_v43, %v1821_v42 }
 0x345   : > { %3306 = vmatprep.subr.bf16.mxu1 %v3667_v24 }
 0x346   : > { %3473 = vpush %v1822_v31  ;;  %v1833_v54 = vrot.slane %v1832_v25, 1 }
 0x348   : > { %3308 = vmatpush3.bf16.msra.mxu1 %v4173_v50  ;;  %v1834_v56 = vmax.f32 %v1832_v25, %v1833_v54 }
 0x349   : > { %3309 = vmatprep.subr.bf16.mxu1 %v3667_v24 }
 0x34a   : > { %3475 = vpush %v1834_v56 }
 0x34c   : > { %3311 = vmatpush3.bf16.msra.mxu1 %v4190_v30 }
 0x34d   : > { %3312 = vmatprep.subr.bf16.mxu1 %v3667_v24 }
 0x350   : > { %3314 = vmatpush3.bf16.msra.mxu1 %v4207_v10 }
 0x351   : > { %3315 = vmatprep.subr.bf16.mxu1 %v3667_v24 }
 0x354   : > { %3317 = vmatpush3.bf16.msra.mxu1 %v4224_v4 }
 0x355   : > { %3318 = vmatprep.subr.bf16.mxu1 %v3667_v24 }
 0x358   : > { %3320 = vmatpush3.bf16.msra.mxu1 %v4241_v52 }
 0x359   : > { %3321 = vmatprep.subr.bf16.mxu1 %v3667_v24 }
 0x35c   : > { %3323 = vmatpush3.bf16.msra.mxu1 %v4255_v33 }
 0x35d   : > { %3324 = vmatprep.subr.bf16.mxu1 %v3667_v24 }
 0x35f   : > { %3156 = vmatmul.mubr.f32.vlgmr.msra.gmra.mrb[4].mxu1 %v3985_v12 }
 0x360   : > { %3326 = vmatpush3.bf16.msra.mxu1 %v4161_v49  ;;  %3190 = vmatprep.mubr.msk.f32.mxu1 %vm3664_vm1, %v3663_v17  ;;  %v2501_v49 = vlaneseq }
 0x361   : > { %3327 = vmatprep.subr.bf16.mxu1 %v3667_v24 }
 0x364   : > { %3329 = vmatpush3.bf16.msra.mxu1 %v4178_v19  ;;  %v2502_v19 = vshrl.u32 %v2501_v49, 7 }
 0x365   : > { %3330 = vmatprep.subr.bf16.mxu1 %v3667_v24 }
 0x368   : > { %3332 = vmatpush3.bf16.msra.mxu1 %v4195_v47 }
 0x369   : > { %3333 = vmatprep.subr.bf16.mxu1 %v3667_v24 }
 0x36c   : > { %3335 = vmatpush3.bf16.msra.mxu1 %v4212_v0 }
 0x36d   : > { %3336 = vmatprep.subr.bf16.mxu1 %v3667_v24 }
 0x370   : > { %3338 = vmatpush3.bf16.msra.mxu1 %v4229_v26 }
 0x371   : > { %3339 = vmatprep.subr.bf16.mxu1 %v3667_v24 }
 0x374   : > { %3341 = vmatpush3.bf16.msra.mxu1 %v4245_v60 }
 0x375   : > { %3342 = vmatprep.subr.bf16.mxu1 %v3667_v24 }
 0x377   : > { %s3474_s18 = spop %3473 }
 0x378   : > { %3344 = vmatpush3.bf16.msra.mxu1 %v4253_v27 }
 0x379   : > { %3345 = vmatprep.subr.bf16.mxu1 %v3667_v24 }
 0x37b   : > { %s3476_s27 = spop %3475 }
 0x37c   : > { %3347 = vmatpush3.bf16.msra.mxu1 %v4259_v3 }
 0x37d   : > { %3348 = vmatprep.subr.bf16.mxu1 %v3667_v24 }
 0x37f   : > { %3191 = vmatmul.mubr.f32.vlgmr.msra.gmra.mrb[4].mxu1 %v3957_v32 }
 0x380   : > { %3350 = vmatpush3.bf16.msra.mxu1 %v4143_v59  ;;  %3225 = vmatprep.mubr.msk.f32.mxu1 %vm3664_vm1, %v3663_v17  ;;  %v1836_v59 = vstv %s3476_s27 }
 0x381   : > { %3351 = vmatprep.subr.bf16.mxu1 %v3667_v24 }
 0x384   : > { %3353 = vmatpush3.bf16.msra.mxu1 %v4157_v36  ;;  %v1824_v36 = vstv %s3474_s18 }
 0x385   : > { %3354 = vmatprep.subr.bf16.mxu1 %v3667_v24 }
 0x388   : > { %3356 = vmatpush3.bf16.msra.mxu1 %v4173_v50  ;;  %v1837_v50 = vsub.f32 %v1836_v59, %v1824_v36 }
 0x389   : > { %3357 = vmatprep.subr.bf16.mxu1 %v3667_v24 }
 0x38a   : > { %3546 = vrcp.f32 %v1837_v50 }
 0x38c   : > { %3359 = vmatpush3.bf16.msra.mxu1 %v4190_v30  ;;  %v2498_v30 = vld [vmem:[#allocation4] sm:$0x1] }
 0x38d   : > { %3360 = vmatprep.subr.bf16.mxu1 %v3667_v24  ;;  %v2499_v47 = vmul.f32 %v2498_v30, %v1824_v36 }
 0x390   : > { %3362 = vmatpush3.bf16.msra.mxu1 %v4207_v10 }
 0x391   : > { %3363 = vmatprep.subr.bf16.mxu1 %v3667_v24 }
 0x394   : > { %3365 = vmatpush3.bf16.msra.mxu1 %v4224_v4  ;;  %v3547_v34 = vpop.eup %3546 }
 0x395   : > { %3366 = vmatprep.subr.bf16.mxu1 %v3667_v24 }
 0x398   : > { %3368 = vmatpush3.bf16.msra.mxu1 %v4241_v52 }
 0x399   : > { %3369 = vmatprep.subr.bf16.mxu1 %v3667_v24  ;;  %v2503_v24 = vsub.s32 0, %v2502_v19 }
 0x39b   : > { %v2504_v10 = vrot.slane %v2499_v47, %v2503_v24 }
 0x39c   : > { %3371 = vmatpush3.bf16.msra.mxu1 %v4255_v33 }
 0x39f   : > { %3226 = vmatmul.mubr.f32.vlgmr.msra.gmra.mrb[4].mxu1 %v3957_v32 }
 0x3ea   : > { %v1944_v17 = vpop.f32.mrb[16].mxu0 }
 0x3eb   : > { %v3052_v12 = vpop.f32.mrb[17].mxu0 }
 0x472   : > { %v2494_v5 = vpop.f32.mrb[4].mxu1 }
 0x473   : > { %v3376_v32 = vadd.f32 %v2494_v5, %v1944_v17  ;;  %v3227_v22 = vpop.f32.mrb[5].mxu1 }
 0x475   : > { %v2506_v0 = vsub.f32 %v3376_v32, %v2504_v10 }
 0x477   : > { %v2507_v57 = vmul.f32 %v3547_v34, %v2506_v0 }
 0x479   : > { %2508 = vst [vmem:[%s143_s30] sm:$0xff] %v2507_v57 }
 0x47a   : > { %3591 = shalt.err (!%p3588_p6)
}
 0x47b   : > { %s3592_s17 = scalar_lea.hbm %s4356_s5, 128  ;;  %s3596_s24 = scalar_lea.hbm %s4406_s1, 256 }
 0x47c   : > { %p3593_p4 = scmp.ne.s32.totalorder %s4356_s5, %s3592_s17  ;;  %p3597_p1 = scmp.lt.u32.totalorder %s4356_s5, %s4406_s1 }
 0x47d   : > { %p3598_p2 = scmp.lt.u32.totalorder %s3596_s24, %s3592_s17  ;;  %p3600_p8 = scmp.lt.u32.totalorder %s3592_s17, %s4356_s5 }
 0x47e   : > { %p3594_p10 = pnand %p3593_p4, %p4415_p9 }
 0x47f   : > { %p3599_p5 = por %p3598_p2, %p3597_p1 }
 0x480   : > { %p3595_p12 = pneg %p3594_p10 }
 0x481   : > { %p3601_p11 = por %p3600_p8, %p3599_p5 }
 0x483   : > { %p3602_p0 = pnand %p3601_p11, %p3595_p12 }
 0x485   : > { %3605 = shalt.err (!%p3602_p0)
}
 0x486   : > { %3479 = dma.vmem_to_hbm [thread:$0]  (%p4415_p9), %s4358_s2, 128, %s4356_s5, %s2510_s12  }
 0x487 PF: > { %s2535_s28 = sand.u32 1, %s3640_s6   ;;  %p4416_p7 = scmp.ne.s32.totalorder %s4411_s21, 0 }
 0x488   : > { %p4417_p13 = scmp.ge.s32.totalorder %s3660_s11, 2  ;;  %s2536_s18 = scalar_lea.sflag [#allocation9], %s2535_s28 }
 0x48a   : > { %p3486_p3 = pnand %p4417_p13, %p4416_p7 }
 0x48c   : > { %3635 = dma.done.wait (!%p3486_p3), %s2536_s18, 128  }
 0x48d   : > { %3637 = vsyncadd (!%p3486_p3), %s2536_s18, 4294967168  ;;  %s17_s11 = sadd.s32 1, %s3660_s11   ;;  %s4418_s6 = smov %s3644_s7 }
 0x48e   : > { %p14_p6 = scmp.ge.s32.totalorder %s17_s11, 4   ;;  %s4419_s7 = smov %s3648_s8 }
 0x48f   : > { %s4420_s8 = smov %s3735_s20  ;;  %s4421_s9 = smov %s3656_s10 }
 0x490   : > { %s4422_s10 = smov %s4424_s14  ;;  %16 = sbr.rel (!%p14_p6) target bundleno = 6 (0x6), region = 78 }
 0x497   :  { %2541 = vsyncpa [#allocation8], 1 }
 0x498   :  { %2543 = vsyncpa [#allocation8 + $0x1], 1 }
 0x499   :  { %2544 = vsyncpa [#allocation9], 1 }
 0x49a   :  { %2546 = vsyncpa [#allocation9 + $0x1], 1 }

</bundles_post_ra>
